<compile_context>
chip_gen: v7x
topology: tpu7x:2x2x1
jax: 0.10.0
libtpu: 0.0.40
codegen_flags: <defaults>
</compile_context>

<pallas_src>
import functools

import jax
import jax.numpy as jnp
from jax.experimental import pallas as pl
from jax.experimental.pallas import tpu as pltpu


def _dsb_kernel(t_valid, xin_ref,
                w1_ref, b1_ref, w12_ref, b12_ref, w22_ref, b22_ref,
                wh1_ref, wh2_ref, bh_ref,
                heads_ref, xc_ref):
    B, Tp, K1 = xin_ref.shape
    BT = B * Tp

    # taps are pre-folded on lanes in the wrapper; operands already bf16
    xin = xin_ref[...].reshape(BT, K1)

    # per-row time index (row r = b*Tp + t)
    r = jax.lax.broadcasted_iota(jnp.int32, (BT, 1), 0)
    t = r % Tp
    t_first = t == 0
    t_last = t == (Tp - 1)

    # ---- stage 1: single fused matmul (both streams, all 3 taps) ----------
    h = jax.nn.relu(jnp.dot(xin, w1_ref[...],
                            preferred_element_type=jnp.float32) + b1_ref[...])
    if t_valid != Tp:
        # zero time-padding rows so they cannot leak into stage 2 via rolls
        h = jnp.where(t < t_valid, h, 0.0)

    h1 = h[:, :256].astype(jnp.bfloat16)       # stream 1 features
    h2 = h[:, 256:].astype(jnp.bfloat16)       # stream 2 features

    # ---- stage 2: per-stream 3-tap conv, rolls on the narrow outputs ------
    def conv3(hb, w_ref, b_ref):
        # y[t] = h[t-1]@w[0] + h[t]@w[1] + h[t+1]@w[2] + b  (zero-padded time)
        # running accumulation: at most one extra (BT,128) temporary live
        acc = jnp.dot(hb, w_ref[1], preferred_element_type=jnp.float32) + b_ref[...]
        z = jnp.dot(hb, w_ref[0], preferred_element_type=jnp.float32)
        acc = acc + jnp.where(t_first, 0.0, pltpu.roll(z, shift=1, axis=0))
        z = jnp.dot(hb, w_ref[2], preferred_element_type=jnp.float32)
        acc = acc + jnp.where(t_last, 0.0, pltpu.roll(z, shift=BT - 1, axis=0))
        return acc

    f1 = jax.nn.relu(conv3(h1, w12_ref, b12_ref))   # (BT, 128)
    f2 = jax.nn.relu(conv3(h2, w22_ref, b22_ref))   # (BT, 128)

    xc = f1 + f2                                    # fused features (f32)
    xc_ref[...] = xc.reshape(B, Tp, 128)

    # ---- merged 1x1 heads: lanes 0..2 are s1/s2/s3 logits ------------------
    logits = (jnp.dot(f1.astype(jnp.bfloat16), wh1_ref[...],
                      preferred_element_type=jnp.float32)
              + jnp.dot(f2.astype(jnp.bfloat16), wh2_ref[...],
                        preferred_element_type=jnp.float32)
              + bh_ref[...])                        # (BT, 8)
    s = jax.nn.sigmoid(logits)
    score = (s[:, 0:1] + s[:, 1:2] + s[:, 2:3]) * (1.0 / 3.0)   # direct 3-lane add
    lane = jax.lax.broadcasted_iota(jnp.int32, (BT, 8), 1)
    heads = jnp.where(lane == 3, score, jnp.where(lane < 3, s, 0.0))
    heads_ref[...] = heads.reshape(B, Tp, 8)


@jax.jit
def ds_base_net(x, params):
    """x: (N, 2*fd, T) float32 in PyTorch NCW layout. Returns dict like the module."""
    N, C, T = x.shape
    fd = C // 2
    K1 = 3 * C
    f32 = jnp.float32
    bf16 = jnp.bfloat16

    # ---- static tiling choices --------------------------------------------
    Tp = ((T + 7) // 8) * 8                  # sublane-aligned time
    ROWS_PER_STEP = 1024                     # target BT rows per grid step
    B = max(1, min(N, ROWS_PER_STEP // Tp))  # no forced >=2-grid-steps cap
    Np = pl.cdiv(N, B) * B

    # ---- input prep: NCW -> NTC, fold the 3 taps onto lanes, pad, bf16 -----
    xt = jnp.transpose(x, (0, 2, 1))                           # (N, T, C)
    zrow = jnp.zeros((N, 1, C), f32)
    x_m1 = jnp.concatenate([zrow, xt[:, :-1]], axis=1)         # x[t-1]
    x_p1 = jnp.concatenate([xt[:, 1:], zrow], axis=1)          # x[t+1]
    xin = jnp.concatenate([x_m1, xt, x_p1], axis=2)            # (N, T, 3C)
    xin = jnp.pad(xin, ((0, Np - N), (0, Tp - T), (0, 0))).astype(bf16)

    # ---- weight prep (tiny, once per call) ---------------------------------
    # stage 1: tap-folded + stream-fused block-diagonal (3C, 512), bf16
    W1 = jnp.zeros((K1, 512), f32)
    for k in range(3):
        W1 = W1.at[k * C:k * C + fd, :256].set(params['w11'][k])
        W1 = W1.at[k * C + fd:(k + 1) * C, 256:].set(params['w21'][k])
    W1 = W1.astype(bf16)
    b1 = jnp.concatenate([params['b11'], params['b21']], axis=1)      # (1, 512) f32
    # stage 2: kept un-fused (per stream), bf16
    W12 = params['w12'].astype(bf16)                                  # (3, 256, 128)
    W22 = params['w22'].astype(bf16)
    b12 = params['b12']                                               # (1, 128) f32
    b22 = params['b22']
    # merged 1x1 heads: l1 = f1@w13+b13, l2 = f2@w23+b23, l3 = (f1+f2)@w3+b3
    Wh1 = jnp.zeros((128, 8), f32).at[:, 0:1].set(params['w13'])
    Wh1 = Wh1.at[:, 2:3].set(params['w3']).astype(bf16)
    Wh2 = jnp.zeros((128, 8), f32).at[:, 1:2].set(params['w23'])
    Wh2 = Wh2.at[:, 2:3].set(params['w3']).astype(bf16)
    bh = jnp.zeros((1, 8), f32)
    bh = bh.at[:, 0:1].set(params['b13']).at[:, 1:2].set(params['b23'])
    bh = bh.at[:, 2:3].set(params['b3'])

    def full_spec(shape):
        nd = len(shape)
        return pl.BlockSpec(shape, lambda n, _nd=nd: (0,) * _nd)

    weights = (W1, b1, W12, b12, W22, b22, Wh1, Wh2, bh)
    in_specs = ([pl.BlockSpec((B, Tp, K1), lambda n: (n, 0, 0))]
                + [full_spec(w.shape) for w in weights])
    out_shapes = (jax.ShapeDtypeStruct((Np, Tp, 8), f32),     # heads: s1,s2,s3,score
                  jax.ShapeDtypeStruct((Np, Tp, 128), f32))   # xc_feat (NTC)
    out_specs = (pl.BlockSpec((B, Tp, 8), lambda n: (n, 0, 0)),
                 pl.BlockSpec((B, Tp, 128), lambda n: (n, 0, 0)))

    heads, xc = pl.pallas_call(
        functools.partial(_dsb_kernel, T),
        out_shape=out_shapes,
        grid=(Np // B,),
        in_specs=in_specs,
        out_specs=out_specs,
        compiler_params=pltpu.CompilerParams(
            dimension_semantics=("parallel",),
            vmem_limit_bytes=48 * 1024 * 1024),    # below v7x's 64 MiB physical
    )(xin, *weights)

    heads = heads[:N, :T]                          # (N, T, 8)
    xc = xc[:N, :T]                                # (N, T, 128)
    to_ncw = lambda a: jnp.transpose(a, (0, 2, 1))
    return {'score': to_ncw(heads[:, :, 3:4]),
            'x1': to_ncw(heads[:, :, 0:1]),
            'x2': to_ncw(heads[:, :, 1:2]),
            'x3': to_ncw(heads[:, :, 2:3]),
            'xc_feat': to_ncw(xc)}


# ----------------------------- pure-JAX reference -----------------------------
def _ref_conv3(xp, w, b):
    T = xp.shape[1] - 2
    acc = jnp.zeros((xp.shape[0], T, w.shape[2]), jnp.float32)
    for k in range(3):
        acc = acc + jnp.einsum('nti,io->nto', xp[:, k:k + T, :], w[k])
    return acc + b


def ds_base_net_ref(x, params):
    N, C, T = x.shape
    fd = C // 2
    x1 = jnp.transpose(x[:, :fd, :], (0, 2, 1))
    x2 = jnp.transpose(x[:, fd:, :], (0, 2, 1))
    pad = ((0, 0), (1, 1), (0, 0))
    h1 = jax.nn.relu(_ref_conv3(jnp.pad(x1, pad), params['w11'], params['b11']))
    f1 = jax.nn.relu(_ref_conv3(jnp.pad(h1, pad), params['w12'], params['b12']))
    s1 = jax.nn.sigmoid(jnp.einsum('nti,io->nto', f1, params['w13']) + params['b13'])
    h2 = jax.nn.relu(_ref_conv3(jnp.pad(x2, pad), params['w21'], params['b21']))
    f2 = jax.nn.relu(_ref_conv3(jnp.pad(h2, pad), params['w22'], params['b22']))
    s2 = jax.nn.sigmoid(jnp.einsum('nti,io->nto', f2, params['w23']) + params['b23'])
    xc = f1 + f2
    s3 = jax.nn.sigmoid(jnp.einsum('nti,io->nto', xc, params['w3']) + params['b3'])
    to_ncw = lambda a: jnp.transpose(a, (0, 2, 1))
    return {'score': to_ncw((s1 + s2 + s3) / 3.0), 'x1': to_ncw(s1),
            'x2': to_ncw(s2), 'x3': to_ncw(s3), 'xc_feat': to_ncw(xc)}


if __name__ == "__main__":
    key = jax.random.PRNGKey(0)
    # module constructed as DSBaseNet(feature_dim=8) -> per-stream fd = 4
    N, C_total, T = 2, 8, 16
    fd = C_total // 2

    keys = jax.random.split(key, 16)

    def rnd(k, shape, scale=0.05):
        return (scale * jax.random.normal(k, shape)).astype(jnp.float32)

    # torch Conv1d weight (out, in, tap) is stored here as (tap, in, out);
    # 1x1 convs as (in, out).  Biases as (1, out).
    params = {
        'w11': rnd(keys[0], (3, fd, 256)),  'b11': rnd(keys[1], (1, 256)),
        'w12': rnd(keys[2], (3, 256, 128)), 'b12': rnd(keys[3], (1, 128)),
        'w13': rnd(keys[4], (128, 1)),      'b13': rnd(keys[5], (1, 1)),
        'w21': rnd(keys[6], (3, fd, 256)),  'b21': rnd(keys[7], (1, 256)),
        'w22': rnd(keys[8], (3, 256, 128)), 'b22': rnd(keys[9], (1, 128)),
        'w23': rnd(keys[10], (128, 1)),     'b23': rnd(keys[11], (1, 1)),
        'w3':  rnd(keys[12], (128, 1)),     'b3':  rnd(keys[13], (1, 1)),
    }
    x = rnd(keys[14], (N, C_total, T), scale=1.0)

    out = ds_base_net(x, params)
    out = jax.block_until_ready(out)

    # sanity-check against a pure-JAX f32 reference of the same math.
    # Tolerance is 5e-3 because matmul OPERANDS are bf16 (f32 accumulation);
    # structural/indexing bugs would show up as O(0.1) errors and still fail.
    ref = ds_base_net_ref(x, params)
    for k in ('score', 'x1', 'x2', 'x3', 'xc_feat'):
        assert out[k].shape == ref[k].shape, (k, out[k].shape, ref[k].shape)
        assert jnp.allclose(out[k], ref[k], atol=5e-3, rtol=5e-3), k

    print("KERNEL_OK")
</pallas_src>

<mosaic_0001>
module attributes {stable_mosaic.version = 11 : i64} {
  func.func @_dsb_kernel(%arg0: i32, %arg1: memref<2x16x24xbf16, #tpu.memory_space<vmem>>, %arg2: memref<24x512xbf16, #tpu.memory_space<vmem>>, %arg3: memref<1x512xf32, #tpu.memory_space<vmem>>, %arg4: memref<3x256x128xbf16, #tpu.memory_space<vmem>>, %arg5: memref<1x128xf32, #tpu.memory_space<vmem>>, %arg6: memref<3x256x128xbf16, #tpu.memory_space<vmem>>, %arg7: memref<1x128xf32, #tpu.memory_space<vmem>>, %arg8: memref<128x8xbf16, #tpu.memory_space<vmem>>, %arg9: memref<128x8xbf16, #tpu.memory_space<vmem>>, %arg10: memref<1x8xf32, #tpu.memory_space<vmem>>, %arg11: memref<2x16x8xf32, #tpu.memory_space<vmem>>, %arg12: memref<2x16x128xf32, #tpu.memory_space<vmem>>) attributes {dimension_semantics = [#tpu.dimension_semantics<parallel>], iteration_bounds = array<i64: 1>, scalar_prefetch = 0 : i64, scratch_operands = 0 : i64, tpu.core_type = #tpu.core_type<tc>, window_params = [{transform_indices = @transform_0, window_bounds = array<i64: 2, 16, 24>}, {pipeline_mode = #tpu.pipeline_mode<synchronous>, transform_indices = @transform_1, window_bounds = array<i64: 24, 512>}, {pipeline_mode = #tpu.pipeline_mode<synchronous>, transform_indices = @transform_2, window_bounds = array<i64: 1, 512>}, {pipeline_mode = #tpu.pipeline_mode<synchronous>, transform_indices = @transform_3, window_bounds = array<i64: 3, 256, 128>}, {pipeline_mode = #tpu.pipeline_mode<synchronous>, transform_indices = @transform_4, window_bounds = array<i64: 1, 128>}, {pipeline_mode = #tpu.pipeline_mode<synchronous>, transform_indices = @transform_5, window_bounds = array<i64: 3, 256, 128>}, {pipeline_mode = #tpu.pipeline_mode<synchronous>, transform_indices = @transform_6, window_bounds = array<i64: 1, 128>}, {pipeline_mode = #tpu.pipeline_mode<synchronous>, transform_indices = @transform_7, window_bounds = array<i64: 128, 8>}, {pipeline_mode = #tpu.pipeline_mode<synchronous>, transform_indices = @transform_8, window_bounds = array<i64: 128, 8>}, {pipeline_mode = #tpu.pipeline_mode<synchronous>, transform_indices = @transform_9, window_bounds = array<i64: 1, 8>}, {transform_indices = @transform_10, window_bounds = array<i64: 2, 16, 8>}, {transform_indices = @transform_11, window_bounds = array<i64: 2, 16, 128>}]} {
    %c0 = arith.constant 0 : index
    %c0_0 = arith.constant 0 : index
    %c0_1 = arith.constant 0 : index
    %0 = vector.load %arg1[%c0, %c0_0, %c0_1] : memref<2x16x24xbf16, #tpu.memory_space<vmem>>, vector<2x16x24xbf16>
    %1 = vector.shape_cast %0 : vector<2x16x24xbf16> to vector<32x24xbf16>
    %2 = tpu.iota {dimensions = array<i32: 0>} : vector<32x1xi32>
    %c16_i32 = arith.constant 16 : i32
    %c0_i32 = arith.constant 0 : i32
    %3 = arith.cmpi eq, %c16_i32, %c0_i32 : i32
    %c1_i32 = arith.constant 1 : i32
    %4 = arith.select %3, %c1_i32, %c16_i32 : i32
    %5 = vector.broadcast %4 : i32 to vector<32x1xi32>
    %6 = arith.remsi %2, %5 : vector<32x1xi32>
    %c0_i32_2 = arith.constant 0 : i32
    %7 = vector.broadcast %c0_i32_2 : i32 to vector<32x1xi32>
    %8 = arith.cmpi ne, %6, %7 : vector<32x1xi32>
    %c0_i32_3 = arith.constant 0 : i32
    %9 = vector.broadcast %c0_i32_3 : i32 to vector<32x1xi32>
    %10 = arith.cmpi slt, %6, %9 : vector<32x1xi32>
    %c0_i32_4 = arith.constant 0 : i32
    %11 = arith.cmpi slt, %4, %c0_i32_4 : i32
    %12 = vector.broadcast %11 : i1 to vector<32x1xi1>
    %13 = vector.broadcast %12 : vector<32x1xi1> to vector<32x1xi1>
    %14 = arith.xori %10, %13 : vector<32x1xi1>
    %15 = arith.andi %14, %8 : vector<32x1xi1>
    %16 = vector.broadcast %4 : i32 to vector<32x1xi32>
    %17 = arith.addi %6, %16 : vector<32x1xi32>
    %18 = arith.select %15, %17, %6 : vector<32x1xi1>, vector<32x1xi32>
    %c0_i32_5 = arith.constant 0 : i32
    %19 = vector.broadcast %c0_i32_5 : i32 to vector<32x1xi32>
    %20 = arith.cmpi eq, %18, %19 : vector<32x1xi32>
    %c15_i32 = arith.constant 15 : i32
    %21 = vector.broadcast %c15_i32 : i32 to vector<32x1xi32>
    %22 = arith.cmpi eq, %18, %21 : vector<32x1xi32>
    %c0_6 = arith.constant 0 : index
    %c0_7 = arith.constant 0 : index
    %23 = vector.load %arg2[%c0_6, %c0_7] : memref<24x512xbf16, #tpu.memory_space<vmem>>, vector<24x512xbf16>
    %cst = arith.constant dense<0.000000e+00> : vector<32x512xf32>
    %24 = tpu.matmul %1, %23, %cst {dimension_numbers = #tpu.dot_dimension_numbers<[1], [0], [0], [1], [0, 0, 1, 1], [], []>} : vector<32x24xbf16>, vector<24x512xbf16>, vector<32x512xf32> -> vector<32x512xf32>
    %c0_8 = arith.constant 0 : index
    %c0_9 = arith.constant 0 : index
    %25 = vector.load %arg3[%c0_8, %c0_9] : memref<1x512xf32, #tpu.memory_space<vmem>>, vector<1x512xf32>
    %26 = vector.broadcast %25 : vector<1x512xf32> to vector<32x512xf32>
    %27 = arith.addf %24, %26 : vector<32x512xf32>
    %cst_10 = arith.constant 0.000000e+00 : f32
    %28 = vector.broadcast %cst_10 : f32 to vector<32x512xf32>
    %29 = arith.maximumf %27, %28 : vector<32x512xf32>
    %30 = vector.extract_strided_slice %29 {offsets = [0, 0], sizes = [32, 256], strides = [1, 1]} : vector<32x512xf32> to vector<32x256xf32>
    %31 = arith.truncf %30 : vector<32x256xf32> to vector<32x256xbf16>
    %32 = vector.extract_strided_slice %29 {offsets = [0, 256], sizes = [32, 256], strides = [1, 1]} : vector<32x512xf32> to vector<32x256xf32>
    %33 = arith.truncf %32 : vector<32x256xf32> to vector<32x256xbf16>
    %c1 = arith.constant 1 : index
    %c0_11 = arith.constant 0 : index
    %c0_12 = arith.constant 0 : index
    %34 = vector.load %arg4[%c1, %c0_11, %c0_12] : memref<3x256x128xbf16, #tpu.memory_space<vmem>>, vector<1x256x128xbf16>
    %35 = vector.shape_cast %34 : vector<1x256x128xbf16> to vector<256x128xbf16>
    %cst_13 = arith.constant dense<0.000000e+00> : vector<32x128xf32>
    %36 = tpu.matmul %31, %35, %cst_13 {dimension_numbers = #tpu.dot_dimension_numbers<[1], [0], [0], [1], [0, 0, 1, 1], [], []>} : vector<32x256xbf16>, vector<256x128xbf16>, vector<32x128xf32> -> vector<32x128xf32>
    %c0_14 = arith.constant 0 : index
    %c0_15 = arith.constant 0 : index
    %37 = vector.load %arg5[%c0_14, %c0_15] : memref<1x128xf32, #tpu.memory_space<vmem>>, vector<1x128xf32>
    %38 = vector.broadcast %37 : vector<1x128xf32> to vector<32x128xf32>
    %39 = arith.addf %36, %38 : vector<32x128xf32>
    %c0_16 = arith.constant 0 : index
    %c0_17 = arith.constant 0 : index
    %c0_18 = arith.constant 0 : index
    %40 = vector.load %arg4[%c0_16, %c0_17, %c0_18] : memref<3x256x128xbf16, #tpu.memory_space<vmem>>, vector<1x256x128xbf16>
    %41 = vector.shape_cast %40 : vector<1x256x128xbf16> to vector<256x128xbf16>
    %cst_19 = arith.constant dense<0.000000e+00> : vector<32x128xf32>
    %42 = tpu.matmul %31, %41, %cst_19 {dimension_numbers = #tpu.dot_dimension_numbers<[1], [0], [0], [1], [0, 0, 1, 1], [], []>} : vector<32x256xbf16>, vector<256x128xbf16>, vector<32x128xf32> -> vector<32x128xf32>
    %c1_i32_20 = arith.constant 1 : i32
    %43 = tpu.dynamic_rotate %42 by %c1_i32_20 dim 0 : vector<32x128xf32>, i32 -> vector<32x128xf32>
    %cst_21 = arith.constant 0.000000e+00 : f32
    %44 = vector.shape_cast %20 : vector<32x1xi1> to vector<32x1xi1>
    %45 = vector.broadcast %44 : vector<32x1xi1> to vector<32x128xi1>
    %46 = vector.broadcast %cst_21 : f32 to vector<32x128xf32>
    %47 = arith.select %45, %46, %43 : vector<32x128xi1>, vector<32x128xf32>
    %48 = arith.addf %39, %47 : vector<32x128xf32>
    %c2 = arith.constant 2 : index
    %c0_22 = arith.constant 0 : index
    %c0_23 = arith.constant 0 : index
    %49 = vector.load %arg4[%c2, %c0_22, %c0_23] : memref<3x256x128xbf16, #tpu.memory_space<vmem>>, vector<1x256x128xbf16>
    %50 = vector.shape_cast %49 : vector<1x256x128xbf16> to vector<256x128xbf16>
    %cst_24 = arith.constant dense<0.000000e+00> : vector<32x128xf32>
    %51 = tpu.matmul %31, %50, %cst_24 {dimension_numbers = #tpu.dot_dimension_numbers<[1], [0], [0], [1], [0, 0, 1, 1], [], []>} : vector<32x256xbf16>, vector<256x128xbf16>, vector<32x128xf32> -> vector<32x128xf32>
    %c31_i32 = arith.constant 31 : i32
    %52 = tpu.dynamic_rotate %51 by %c31_i32 dim 0 : vector<32x128xf32>, i32 -> vector<32x128xf32>
    %cst_25 = arith.constant 0.000000e+00 : f32
    %53 = vector.shape_cast %22 : vector<32x1xi1> to vector<32x1xi1>
    %54 = vector.broadcast %53 : vector<32x1xi1> to vector<32x128xi1>
    %55 = vector.broadcast %cst_25 : f32 to vector<32x128xf32>
    %56 = arith.select %54, %55, %52 : vector<32x128xi1>, vector<32x128xf32>
    %57 = arith.addf %48, %56 : vector<32x128xf32>
    %cst_26 = arith.constant 0.000000e+00 : f32
    %58 = vector.broadcast %cst_26 : f32 to vector<32x128xf32>
    %59 = arith.maximumf %57, %58 : vector<32x128xf32>
    %c1_27 = arith.constant 1 : index
    %c0_28 = arith.constant 0 : index
    %c0_29 = arith.constant 0 : index
    %60 = vector.load %arg6[%c1_27, %c0_28, %c0_29] : memref<3x256x128xbf16, #tpu.memory_space<vmem>>, vector<1x256x128xbf16>
    %61 = vector.shape_cast %60 : vector<1x256x128xbf16> to vector<256x128xbf16>
    %cst_30 = arith.constant dense<0.000000e+00> : vector<32x128xf32>
    %62 = tpu.matmul %33, %61, %cst_30 {dimension_numbers = #tpu.dot_dimension_numbers<[1], [0], [0], [1], [0, 0, 1, 1], [], []>} : vector<32x256xbf16>, vector<256x128xbf16>, vector<32x128xf32> -> vector<32x128xf32>
    %c0_31 = arith.constant 0 : index
    %c0_32 = arith.constant 0 : index
    %63 = vector.load %arg7[%c0_31, %c0_32] : memref<1x128xf32, #tpu.memory_space<vmem>>, vector<1x128xf32>
    %64 = vector.broadcast %63 : vector<1x128xf32> to vector<32x128xf32>
    %65 = arith.addf %62, %64 : vector<32x128xf32>
    %c0_33 = arith.constant 0 : index
    %c0_34 = arith.constant 0 : index
    %c0_35 = arith.constant 0 : index
    %66 = vector.load %arg6[%c0_33, %c0_34, %c0_35] : memref<3x256x128xbf16, #tpu.memory_space<vmem>>, vector<1x256x128xbf16>
    %67 = vector.shape_cast %66 : vector<1x256x128xbf16> to vector<256x128xbf16>
    %cst_36 = arith.constant dense<0.000000e+00> : vector<32x128xf32>
    %68 = tpu.matmul %33, %67, %cst_36 {dimension_numbers = #tpu.dot_dimension_numbers<[1], [0], [0], [1], [0, 0, 1, 1], [], []>} : vector<32x256xbf16>, vector<256x128xbf16>, vector<32x128xf32> -> vector<32x128xf32>
    %c1_i32_37 = arith.constant 1 : i32
    %69 = tpu.dynamic_rotate %68 by %c1_i32_37 dim 0 : vector<32x128xf32>, i32 -> vector<32x128xf32>
    %cst_38 = arith.constant 0.000000e+00 : f32
    %70 = vector.shape_cast %20 : vector<32x1xi1> to vector<32x1xi1>
    %71 = vector.broadcast %70 : vector<32x1xi1> to vector<32x128xi1>
    %72 = vector.broadcast %cst_38 : f32 to vector<32x128xf32>
    %73 = arith.select %71, %72, %69 : vector<32x128xi1>, vector<32x128xf32>
    %74 = arith.addf %65, %73 : vector<32x128xf32>
    %c2_39 = arith.constant 2 : index
    %c0_40 = arith.constant 0 : index
    %c0_41 = arith.constant 0 : index
    %75 = vector.load %arg6[%c2_39, %c0_40, %c0_41] : memref<3x256x128xbf16, #tpu.memory_space<vmem>>, vector<1x256x128xbf16>
    %76 = vector.shape_cast %75 : vector<1x256x128xbf16> to vector<256x128xbf16>
    %cst_42 = arith.constant dense<0.000000e+00> : vector<32x128xf32>
    %77 = tpu.matmul %33, %76, %cst_42 {dimension_numbers = #tpu.dot_dimension_numbers<[1], [0], [0], [1], [0, 0, 1, 1], [], []>} : vector<32x256xbf16>, vector<256x128xbf16>, vector<32x128xf32> -> vector<32x128xf32>
    %c31_i32_43 = arith.constant 31 : i32
    %78 = tpu.dynamic_rotate %77 by %c31_i32_43 dim 0 : vector<32x128xf32>, i32 -> vector<32x128xf32>
    %cst_44 = arith.constant 0.000000e+00 : f32
    %79 = vector.shape_cast %22 : vector<32x1xi1> to vector<32x1xi1>
    %80 = vector.broadcast %79 : vector<32x1xi1> to vector<32x128xi1>
    %81 = vector.broadcast %cst_44 : f32 to vector<32x128xf32>
    %82 = arith.select %80, %81, %78 : vector<32x128xi1>, vector<32x128xf32>
    %83 = arith.addf %74, %82 : vector<32x128xf32>
    %cst_45 = arith.constant 0.000000e+00 : f32
    %84 = vector.broadcast %cst_45 : f32 to vector<32x128xf32>
    %85 = arith.maximumf %83, %84 : vector<32x128xf32>
    %86 = arith.addf %59, %85 : vector<32x128xf32>
    %87 = vector.shape_cast %86 : vector<32x128xf32> to vector<2x16x128xf32>
    %c0_46 = arith.constant 0 : index
    %c0_47 = arith.constant 0 : index
    %c0_48 = arith.constant 0 : index
    %88 = vector.load %arg12[%c0_46, %c0_47, %c0_48] : memref<2x16x128xf32, #tpu.memory_space<vmem>>, vector<2x16x128xf32>
    tpu.vector_store %arg12[%c0_46, %c0_47, %c0_48], %87 {strides = array<i32>} : memref<2x16x128xf32, #tpu.memory_space<vmem>>, vector<2x16x128xf32>,
    %89 = arith.truncf %59 : vector<32x128xf32> to vector<32x128xbf16>
    %c0_49 = arith.constant 0 : index
    %c0_50 = arith.constant 0 : index
    %90 = vector.load %arg8[%c0_49, %c0_50] : memref<128x8xbf16, #tpu.memory_space<vmem>>, vector<128x8xbf16>
    %cst_51 = arith.constant dense<0.000000e+00> : vector<32x8xf32>
    %91 = tpu.matmul %89, %90, %cst_51 {dimension_numbers = #tpu.dot_dimension_numbers<[1], [0], [0], [1], [0, 0, 1, 1], [], []>} : vector<32x128xbf16>, vector<128x8xbf16>, vector<32x8xf32> -> vector<32x8xf32>
    %92 = arith.truncf %85 : vector<32x128xf32> to vector<32x128xbf16>
    %c0_52 = arith.constant 0 : index
    %c0_53 = arith.constant 0 : index
    %93 = vector.load %arg9[%c0_52, %c0_53] : memref<128x8xbf16, #tpu.memory_space<vmem>>, vector<128x8xbf16>
    %cst_54 = arith.constant dense<0.000000e+00> : vector<32x8xf32>
    %94 = tpu.matmul %92, %93, %cst_54 {dimension_numbers = #tpu.dot_dimension_numbers<[1], [0], [0], [1], [0, 0, 1, 1], [], []>} : vector<32x128xbf16>, vector<128x8xbf16>, vector<32x8xf32> -> vector<32x8xf32>
    %95 = arith.addf %91, %94 : vector<32x8xf32>
    %c0_55 = arith.constant 0 : index
    %c0_56 = arith.constant 0 : index
    %96 = vector.load %arg10[%c0_55, %c0_56] : memref<1x8xf32, #tpu.memory_space<vmem>>, vector<1x8xf32>
    %97 = vector.broadcast %96 : vector<1x8xf32> to vector<32x8xf32>
    %98 = arith.addf %95, %97 : vector<32x8xf32>
    %99 = arith.negf %98 : vector<32x8xf32>
    %100 = math.exp %99 : vector<32x8xf32>
    %cst_57 = arith.constant 1.000000e+00 : f32
    %101 = vector.broadcast %cst_57 : f32 to vector<32x8xf32>
    %102 = arith.addf %101, %100 : vector<32x8xf32>
    %103 = arith.divf %101, %102 : vector<32x8xf32>
    %104 = vector.extract_strided_slice %103 {offsets = [0, 0], sizes = [32, 1], strides = [1, 1]} : vector<32x8xf32> to vector<32x1xf32>
    %105 = vector.extract_strided_slice %103 {offsets = [0, 1], sizes = [32, 1], strides = [1, 1]} : vector<32x8xf32> to vector<32x1xf32>
    %106 = arith.addf %104, %105 : vector<32x1xf32>
    %107 = vector.extract_strided_slice %103 {offsets = [0, 2], sizes = [32, 1], strides = [1, 1]} : vector<32x8xf32> to vector<32x1xf32>
    %108 = arith.addf %106, %107 : vector<32x1xf32>
    %cst_58 = arith.constant 0.333333343 : f32
    %109 = vector.broadcast %cst_58 : f32 to vector<32x1xf32>
    %110 = arith.mulf %108, %109 : vector<32x1xf32>
    %111 = tpu.iota {dimensions = array<i32: 1>} : vector<32x8xi32>
    %c3_i32 = arith.constant 3 : i32
    %112 = vector.broadcast %c3_i32 : i32 to vector<32x8xi32>
    %113 = arith.cmpi eq, %111, %112 : vector<32x8xi32>
    %c3_i32_59 = arith.constant 3 : i32
    %114 = vector.broadcast %c3_i32_59 : i32 to vector<32x8xi32>
    %115 = arith.cmpi slt, %111, %114 : vector<32x8xi32>
    %cst_60 = arith.constant 0.000000e+00 : f32
    %116 = vector.broadcast %cst_60 : f32 to vector<32x8xf32>
    %117 = arith.select %115, %103, %116 : vector<32x8xi1>, vector<32x8xf32>
    %118 = vector.shape_cast %110 : vector<32x1xf32> to vector<32x1xf32>
    %119 = vector.broadcast %118 : vector<32x1xf32> to vector<32x8xf32>
    %120 = arith.select %113, %119, %117 : vector<32x8xi1>, vector<32x8xf32>
    %121 = vector.shape_cast %120 : vector<32x8xf32> to vector<2x16x8xf32>
    %c0_61 = arith.constant 0 : index
    %c0_62 = arith.constant 0 : index
    %c0_63 = arith.constant 0 : index
    %122 = vector.load %arg11[%c0_61, %c0_62, %c0_63] : memref<2x16x8xf32, #tpu.memory_space<vmem>>, vector<2x16x8xf32>
    tpu.vector_store %arg11[%c0_61, %c0_62, %c0_63], %121 {strides = array<i32>} : memref<2x16x8xf32, #tpu.memory_space<vmem>>, vector<2x16x8xf32>,
    return
  }
  func.func @transform_0(%arg0: i32) -> (i32, i32, i32) {
    %c0_i32 = arith.constant 0 : i32
    %c0_i32_0 = arith.constant 0 : i32
    %c0_i32_1 = arith.constant 0 : i32
    return %arg0, %c0_i32, %c0_i32_0 : i32, i32, i32
  }
  func.func @transform_1(%arg0: i32) -> (i32, i32) {
    %c0_i32 = arith.constant 0 : i32
    %c0_i32_0 = arith.constant 0 : i32
    %c0_i32_1 = arith.constant 0 : i32
    return %c0_i32, %c0_i32_0 : i32, i32
  }
  func.func @transform_2(%arg0: i32) -> (i32, i32) {
    %c0_i32 = arith.constant 0 : i32
    %c0_i32_0 = arith.constant 0 : i32
    %c0_i32_1 = arith.constant 0 : i32
    return %c0_i32, %c0_i32_0 : i32, i32
  }
  func.func @transform_3(%arg0: i32) -> (i32, i32, i32) {
    %c0_i32 = arith.constant 0 : i32
    %c0_i32_0 = arith.constant 0 : i32
    %c0_i32_1 = arith.constant 0 : i32
    %c0_i32_2 = arith.constant 0 : i32
    return %c0_i32, %c0_i32_0, %c0_i32_1 : i32, i32, i32
  }
  func.func @transform_4(%arg0: i32) -> (i32, i32) {
    %c0_i32 = arith.constant 0 : i32
    %c0_i32_0 = arith.constant 0 : i32
    %c0_i32_1 = arith.constant 0 : i32
    return %c0_i32, %c0_i32_0 : i32, i32
  }
  func.func @transform_5(%arg0: i32) -> (i32, i32, i32) {
    %c0_i32 = arith.constant 0 : i32
    %c0_i32_0 = arith.constant 0 : i32
    %c0_i32_1 = arith.constant 0 : i32
    %c0_i32_2 = arith.constant 0 : i32
    return %c0_i32, %c0_i32_0, %c0_i32_1 : i32, i32, i32
  }
  func.func @transform_6(%arg0: i32) -> (i32, i32) {
    %c0_i32 = arith.constant 0 : i32
    %c0_i32_0 = arith.constant 0 : i32
    %c0_i32_1 = arith.constant 0 : i32
    return %c0_i32, %c0_i32_0 : i32, i32
  }
  func.func @transform_7(%arg0: i32) -> (i32, i32) {
    %c0_i32 = arith.constant 0 : i32
    %c0_i32_0 = arith.constant 0 : i32
    %c0_i32_1 = arith.constant 0 : i32
    return %c0_i32, %c0_i32_0 : i32, i32
  }
  func.func @transform_8(%arg0: i32) -> (i32, i32) {
    %c0_i32 = arith.constant 0 : i32
    %c0_i32_0 = arith.constant 0 : i32
    %c0_i32_1 = arith.constant 0 : i32
    return %c0_i32, %c0_i32_0 : i32, i32
  }
  func.func @transform_9(%arg0: i32) -> (i32, i32) {
    %c0_i32 = arith.constant 0 : i32
    %c0_i32_0 = arith.constant 0 : i32
    %c0_i32_1 = arith.constant 0 : i32
    return %c0_i32, %c0_i32_0 : i32, i32
  }
  func.func @transform_10(%arg0: i32) -> (i32, i32, i32) {
    %c0_i32 = arith.constant 0 : i32
    %c0_i32_0 = arith.constant 0 : i32
    %c0_i32_1 = arith.constant 0 : i32
    return %arg0, %c0_i32, %c0_i32_0 : i32, i32, i32
  }
  func.func @transform_11(%arg0: i32) -> (i32, i32, i32) {
    %c0_i32 = arith.constant 0 : i32
    %c0_i32_0 = arith.constant 0 : i32
    %c0_i32_1 = arith.constant 0 : i32
    return %arg0, %c0_i32, %c0_i32_0 : i32, i32, i32
  }
}

</mosaic_0001>

<bundles_post_ra>
// kernel: ds_base_net.1
= control target key start
LH: loop header
LB: loop body
LE: loop exit
PB: predicated region body
PF: predicated region fallthrough
CT: control target
= control target key end

     0   :  { %vm179_vm0 = vcmask 1043456   ;;  %v2529_v3 = vmov 0   ;;  %vm172_vm1 = vcmask 195584   ;;  %s3177_s0 = inlined_call_operand.vmem [shape: bf16[2,16,24], index: 0, kind: input, shape index: {}]   ;;  %s3178_s1 = inlined_call_operand.vmem [shape: bf16[24,512], index: 1, kind: input, shape index: {}]   ;;  %s3179_s2 = inlined_call_operand.vmem [shape: f32[1,512], index: 2, kind: input, shape index: {}]   ;;  %s3180_s3 = inlined_call_operand.vmem [shape: bf16[3,256,128], index: 3, kind: input, shape index: {}]   ;;  %s3181_s4 = inlined_call_operand.vmem [shape: f32[1,128], index: 4, kind: input, shape index: {}]   ;;  %s3182_s5 = inlined_call_operand.vmem [shape: bf16[3,256,128], index: 5, kind: input, shape index: {}]   ;;  %s3183_s6 = inlined_call_operand.vmem [shape: f32[1,128], index: 6, kind: input, shape index: {}]   ;;  %s3184_s7 = inlined_call_operand.vmem [shape: bf16[128,8], index: 7, kind: input, shape index: {}]   ;;  %s3185_s8 = inlined_call_operand.vmem [shape: bf16[128,8], index: 8, kind: input, shape index: {}]   ;;  %s3186_s9 = inlined_call_operand.vmem [shape: f32[1,8], index: 9, kind: input, shape index: {}]   ;;  %s3187_s10 = inlined_call_operand.vmem [shape: f32[2,16,8], index: 10, kind: output, shape index: {0}]   ;;  %s3188_s11 = inlined_call_operand.hbm [shape: f32[2,16,128], index: 11, kind: output, shape index: {1}]  }
   0x1   :  { %v2365_v0 = vld [vmem:[%s3178_s1 + $0x4] ss:$16 sps:$4 sm:$0xff]   ;;  %v2367_v1 = vld [vmem:[%s3178_s1] ss:$16 sps:$4 sm:$0xff]   ;;  %224 = vmatprep.mubr.bf16.mxu0 %v2529_v3  ;;  %277 = vmatprep.mubr.bf16.mxu1 %v2529_v3  ;;  %v2372_v8 = vld [vmem:[%s3178_s1 + $0xc] ss:$16 sps:$4 sm:$0xff]  }
   0x2   :  { %v108_v2 = vld [vmem:[%s3178_s1 + $0x20] sm:$0xff]  ;;  %192 = vmatprep.subr.bf16.mxu0 %v2365_v0  ;;  %2363 = vset.pattern.permute.xlu0 %v2529_v3  ;;  %v2374_v9 = vld [vmem:[%s3178_s1 + $0x8] ss:$16 sps:$4 sm:$0xff]   ;;  %v2385_v23 = vld [vmem:[%s3180_s3 + $0xd0] sm:$0xff]  }
   0x3   :  { %v1869_v4 = vcombine.high %v108_v2, %v108_v2  ;;  %v1868_v5 = vcombine.low %v108_v2, %v108_v2  ;;  %193 = vmatpush1.bf16.msra.mxu0 %v2367_v1  ;;  %2364 = vset.pattern.permute.xlu1 %v2529_v3  ;;  %v2370_v7 = vld [vmem:[%s3177_s0] sm:$0xff]   ;;  %v109_v10 = vld [vmem:[%s3178_s1 + $0x28] sm:$0xff]  ;;  %v2386_v24 = vld [vmem:[%s3180_s3 + $0x50] sm:$0xff]  }
   0x4   :  { %245 = vmatprep.subr.bf16.mxu1 %v2372_v8  ;;  %v1871_v11 = vcombine.high %v109_v10, %v109_v10  ;;  %v1870_v12 = vcombine.low %v109_v10, %v109_v10  ;;  %v2377_v13 = vld [vmem:[%s3180_s3 + $0xc0] sm:$0xff]   ;;  %v2381_v18 = vld [vmem:[%s3180_s3 + $0xc8] sm:$0xff]   ;;  %v2387_v25 = vld [vmem:[%s3180_s3 + $0x90] sm:$0xff]  }
   0x5   :  { %1872 = vmatprep.subr.msk.bf16.mxu0 %vm179_vm0, %v1869_v4  ;;  %v181_v6 = vsel %vm179_vm0, %v1868_v5, 0  ;;  %246 = vmatpush1.bf16.msra.mxu1 %v2374_v9  ;;  %v2378_v14 = vld [vmem:[%s3180_s3 + $0x40] sm:$0xff]   ;;  %v2382_v19 = vld [vmem:[%s3180_s3 + $0x48] sm:$0xff]   ;;  %v2388_v26 = vld [vmem:[%s3180_s3 + $0x10] sm:$0xff]  }
   0x6   :  { %1875 = vmatprep.subr.msk.bf16.mxu1 %vm179_vm0, %v1871_v11  ;;  %v187_v15 = vsel %vm179_vm0, %v1870_v12, 0  ;;  %v2379_v16 = vld [vmem:[%s3180_s3 + $0x80] sm:$0xff]   ;;  %v2371_v20 = vld [vmem:[%s3177_s0 + $0x8] sm:$0xff]   ;;  %v2389_v27 = vld [vmem:[%s3180_s3 + $0xd8] sm:$0xff]  }
   0x7   :  { %195 = vmatpush1.bf16.msra.mxu0 %v181_v6  ;;  %v2380_v17 = vld [vmem:[%s3180_s3] sm:$0xff]   ;;  %v2383_v21 = vld [vmem:[%s3180_s3 + $0x88] sm:$0xff]   ;;  %v2390_v28 = vld [vmem:[%s3180_s3 + $0x58] sm:$0xff]  }
   0x8   :  { %2125 = vmatprep.subr.bf16.mxu0 %v2377_v13  ;;  %v2384_v22 = vld [vmem:[%s3180_s3 + $0x8] sm:$0xff]   ;;  %v2391_v29 = vld [vmem:[%s3180_s3 + $0x98] sm:$0xff]   ;;  %v2393_v31 = vld [vmem:[%s3180_s3 + $0xe0] sm:$0xff]  }
   0x9   :  { %248 = vmatpush1.bf16.msra.mxu1 %v187_v15  ;;  %v2392_v30 = vld [vmem:[%s3180_s3 + $0x18] sm:$0xff]   ;;  %v2394_v32 = vld [vmem:[%s3180_s3 + $0x60] sm:$0xff]   ;;  %v2397_v35 = vld [vmem:[%s3180_s3 + $0xe8] sm:$0xff]  }
   0xa   :  { %1873 = vmatmul.mubr.msk.bf16.vlgmr.msra.gmra.mrb[0].mxu0 %vm172_vm1, %v2370_v7  ;;  %2153 = vmatprep.subr.bf16.mxu1 %v2378_v14  ;;  %v2395_v33 = vld [vmem:[%s3180_s3 + $0xa0] sm:$0xff]   ;;  %v2398_v36 = vld [vmem:[%s3180_s3 + $0x68] sm:$0xff]  }
   0xb   :  { %234 = vmatprep.mubr.bf16.mxu0 %v2529_v3  ;;  %2126 = vmatpush3.bf16.msra.mxu0 %v2379_v16  ;;  %v2396_v34 = vld [vmem:[%s3180_s3 + $0x20] sm:$0xff]   ;;  %v2399_v37 = vld [vmem:[%s3180_s3 + $0xa8] sm:$0xff]  }
   0xc   :  { %2127 = vmatprep.subr.bf16.mxu0 %v2381_v18  ;;  %1876 = vmatmul.mubr.msk.bf16.vlgmr.msra.gmra.mrb[0].mxu1 %vm172_vm1, %v2370_v7  ;;  %v2400_v38 = vld [vmem:[%s3180_s3 + $0x28] sm:$0xff]  }
   0xd   :  { %287 = vmatprep.mubr.bf16.mxu1 %v2529_v3  ;;  %2154 = vmatpush3.bf16.msra.mxu1 %v2380_v17 }
   0xe   :  { %2155 = vmatprep.subr.bf16.mxu1 %v2382_v19 }
   0xf   :  { %2128 = vmatpush3.bf16.msra.mxu0 %v2383_v21 }
  0x10   :  { %2129 = vmatprep.subr.bf16.mxu0 %v2385_v23 }
  0x11   :  { %2156 = vmatpush3.bf16.msra.mxu1 %v2384_v22 }
  0x12   :  { %1874 = vmatmul.mubr.msk.bf16.gmra.mrb[4].mxu0 %vm172_vm1, %v2371_v20  ;;  %2157 = vmatprep.subr.bf16.mxu1 %v2386_v24 }
  0x13   :  { %2130 = vmatpush3.bf16.msra.mxu0 %v2387_v25 }
  0x14   :  { %2131 = vmatprep.subr.bf16.mxu0 %v2389_v27  ;;  %1877 = vmatmul.mubr.msk.bf16.gmra.mrb[4].mxu1 %vm172_vm1, %v2371_v20 }
  0x15   :  { %2158 = vmatpush3.bf16.msra.mxu1 %v2388_v26 }
  0x16   :  { %2159 = vmatprep.subr.bf16.mxu1 %v2390_v28 }
  0x17   :  { %2132 = vmatpush3.bf16.msra.mxu0 %v2391_v29 }
  0x18   :  { %2133 = vmatprep.subr.bf16.mxu0 %v2393_v31 }
  0x19   :  { %2160 = vmatpush3.bf16.msra.mxu1 %v2392_v30 }
  0x1a   :  { %2161 = vmatprep.subr.bf16.mxu1 %v2394_v32 }
  0x1b   :  { %2134 = vmatpush3.bf16.msra.mxu0 %v2395_v33 }
  0x1c   :  { %2135 = vmatprep.subr.bf16.mxu0 %v2397_v35 }
  0x1d   :  { %2162 = vmatpush3.bf16.msra.mxu1 %v2396_v34 }
  0x1e   :  { %2163 = vmatprep.subr.bf16.mxu1 %v2398_v36 }
  0x1f   :  { %2136 = vmatpush3.bf16.msra.mxu0 %v2399_v37 }
  0x21   :  { %2164 = vmatpush3.bf16.msra.mxu1 %v2400_v38 }
  0x22   :  { %17 = vsyncpa [#allocation3], 0  ;;  %v2401_v39 = vld [vmem:[%s3180_s3 + $0xf0] sm:$0xff]   ;;  %v2405_v43 = vld [vmem:[%s3180_s3 + $0xf8] sm:$0xff]   ;;  %v43_v49 = vlaneseq  ;;  %s2531_s18 = smov 126   ;;  %s2532_s19 = smov [#allocation2]  }
  0x23   :  { %v2402_v40 = vld [vmem:[%s3180_s3 + $0x70] sm:$0xff]   ;;  %2137 = vmatprep.subr.bf16.mxu0 %v2401_v39  ;;  %v2406_v44 = vld [vmem:[%s3180_s3 + $0x78] sm:$0xff]   ;;  %v2409_v47 = vld [vmem:[%s3180_s3 + $0x140] sm:$0xff]  }
  0x24   :  { %v2403_v41 = vld [vmem:[%s3180_s3 + $0xb0] sm:$0xff]   ;;  %2165 = vmatprep.subr.bf16.mxu1 %v2402_v40  ;;  %v2407_v45 = vld [vmem:[%s3180_s3 + $0xb8] sm:$0xff]   ;;  %v2410_v48 = vld [vmem:[%s3182_s5 + $0xc0] sm:$0xff]   ;;  %v2730_v50 = vshrl.u32 %v43_v49, 7 }
  0x25   :  { %v2404_v42 = vld [vmem:[%s3180_s3 + $0x30] sm:$0xff]   ;;  %2138 = vmatpush3.bf16.msra.mxu0 %v2403_v41  ;;  %v2408_v46 = vld [vmem:[%s3180_s3 + $0x38] sm:$0xff]   ;;  %v110_v52 = vld [vmem:[%s3179_s2] sm:$0xf] }
  0x26   :  { %2166 = vmatpush3.bf16.msra.mxu1 %v2404_v42  ;;  %2139 = vmatprep.subr.bf16.mxu0 %v2405_v43  ;;  %v114_v51 = vsub.s32 0, %v2730_v50  ;;  %v118_v53 = vsub.s32 1, %v2730_v50  ;;  %v122_v55 = vsub.s32 2, %v2730_v50  ;;  %v126_v57 = vsub.s32 3, %v2730_v50  ;;  %v2411_v19 = vld [vmem:[%s3180_s3 + $0x100] sm:$0xff]   ;;  %v2413_v25 = vld [vmem:[%s3180_s3 + $0x148] sm:$0xff]  }
  0x27   :  { %2167 = vmatprep.subr.bf16.mxu1 %v2406_v44  ;;  %v2412_v20 = vld [vmem:[%s3182_s5 + $0x80] sm:$0xff]   ;;  %v2414_v26 = vld [vmem:[%s3182_s5 + $0xc8] sm:$0xff]   ;;  %v2417_v42 = vld [vmem:[%s3180_s3 + $0x150] sm:$0xff]   ;;  %vm688_vm2 = vcmp.lt.s32.totalorder %v2730_v50, 1  ;;  %vm891_vm5 = vcmp.lt.s32.totalorder %v2730_v50, 7 }
  0x28   :  { %v115_v54 = vrot.slane %v110_v52, %v114_v51  ;;  %v119_v56 = vrot.slane %v110_v52, %v118_v53  ;;  %v123_v61 = vrot.slane %v110_v52, %v122_v55  ;;  %v2739_v0 = vrot.slane %v110_v52, %v126_v57  ;;  %v2415_v37 = vld [vmem:[%s3180_s3 + $0x108] sm:$0xff]   ;;  %v2418_v43 = vld [vmem:[%s3182_s5 + $0xd0] sm:$0xff]  }
  0x29   :  { %2140 = vmatpush3.bf16.msra.mxu0 %v2407_v45  ;;  %v2416_v38 = vld [vmem:[%s3182_s5 + $0x88] sm:$0xff]   ;;  %v2420_v57 = vld [vmem:[%s3182_s5 + $0x90] sm:$0xff]  }
  0x2a   :  { %2168 = vmatpush3.bf16.msra.mxu1 %v2408_v46  ;;  %2181 = vmatprep.subr.bf16.mxu0 %v2409_v47 }
  0x2b   :  { %2209 = vmatprep.subr.bf16.mxu1 %v2410_v48 }
  0xdd   :  { %v226_v58 = vpop.f32.mrb[0].mxu0 }
  0xde   :  { %v227_v59 = vadd.f32 %v226_v58, %v115_v54  ;;  %v228_v60 = vpop.f32.mrb[1].mxu0 }
  0xdf   :  { %v229_v62 = vadd.f32 %v228_v60, %v119_v56  ;;  %v230_v63 = vpop.f32.mrb[2].mxu0  ;;  %v279_v4 = vpop.f32.mrb[0].mxu1  ;;  %v2421_v60 = vld [vmem:[%s3180_s3 + $0x158] sm:$0xff]  }
  0xe0   :  { %v231_v1 = vadd.f32 %v230_v63, %v115_v54  ;;  %v232_v2 = vpop.f32.mrb[3].mxu0  ;;  %v298_v5 = vmax.f32 %v227_v59, 0.0  ;;  %v280_v7 = vadd.f32 %v279_v4, %v123_v61  ;;  %v281_v8 = vpop.f32.mrb[1].mxu1  ;;  %v2425_v4 = vld [vmem:[%s3180_s3 + $0x160] sm:$0xff]  }
  0xe1   :  { %v233_v3 = vadd.f32 %v232_v2, %v119_v56  ;;  %v299_v9 = vmax.f32 %v229_v62, 0.0  ;;  %v282_v11 = vadd.f32 %v281_v8, %v2739_v0  ;;  %v283_v12 = vpop.f32.mrb[2].mxu1  ;;  %v2422_v62 = vld [vmem:[%s3182_s5 + $0xd8] sm:$0xff]   ;;  %v2429_v8 = vld [vmem:[%s3180_s3 + $0x168] sm:$0xff]  }
  0xe2   :  { %v302_v6 = vmax.f32 %v231_v1, 0.0  ;;  %v300_v14 = vmax.f32 %v280_v7, 0.0  ;;  %v284_v15 = vadd.f32 %v283_v12, %v123_v61  ;;  %v285_v16 = vpop.f32.mrb[3].mxu1  ;;  %v2423_v1 = vld [vmem:[%s3180_s3 + $0x118] sm:$0xff]   ;;  %v2428_v7 = vld [vmem:[%s3182_s5 + $0xa0] sm:$0xff]   ;;  %v2433_v12 = vld [vmem:[%s3180_s3 + $0x170] sm:$0xff]  }
  0xe3   :  { %v303_v10 = vmax.f32 %v233_v3, 0.0  ;;  %v301_v21 = vmax.f32 %v282_v11, 0.0  ;;  %v286_v22 = vadd.f32 %v285_v16, %v2739_v0  ;;  %v2424_v2 = vld [vmem:[%s3182_s5 + $0x98] sm:$0xff]   ;;  %v2432_v11 = vld [vmem:[%s3182_s5 + $0xa8] sm:$0xff]   ;;  %v2436_v16 = vld [vmem:[%s3182_s5 + $0xb0] sm:$0xff]  }
  0xe4   :  { %v2742_v13 = vpack.c.bf16 %v302_v6, %v298_v5  ;;  %v304_v27 = vmax.f32 %v284_v15, 0.0  ;;  %v2426_v5 = vld [vmem:[%s3182_s5 + $0xe0] sm:$0xff]   ;;  %v2435_v15 = vld [vmem:[%s3180_s3 + $0x130] sm:$0xff]  }
  0xe5   :  { %v2744_v17 = vpack.c.bf16 %v303_v10, %v299_v9  ;;  %v236_v18 = vpop.f32.mrb[4].mxu0  ;;  %v305_v30 = vmax.f32 %v286_v22, 0.0  ;;  %v2427_v6 = vld [vmem:[%s3180_s3 + $0x120] sm:$0xff]   ;;  %v2430_v9 = vld [vmem:[%s3182_s5 + $0xe8] sm:$0xff]  }
  0xe6   :  { %v237_v23 = vadd.f32 %v236_v18, %v115_v54  ;;  %v238_v24 = vpop.f32.mrb[5].mxu0  ;;  %v2763_v34 = vpack.c.bf16 %v304_v27, %v300_v14  ;;  %v2431_v10 = vld [vmem:[%s3180_s3 + $0x128] sm:$0xff]   ;;  %v2434_v14 = vld [vmem:[%s3182_s5 + $0xf0] sm:$0xff]   ;;  %v2438_v18 = vld [vmem:[%s3182_s5 + $0xf8] sm:$0xff]  }
  0xe7   :  { %v239_v28 = vadd.f32 %v238_v24, %v119_v56  ;;  %v240_v29 = vpop.f32.mrb[6].mxu0  ;;  %490 = vmatprep.mubr.bf16.mxu0 %v2744_v17  ;;  %667 = vmatprep.mubr.bf16.mxu1 %v2744_v17  ;;  %v2771_v39 = vpack.c.bf16 %v305_v30, %v301_v21  ;;  %v289_v40 = vpop.f32.mrb[4].mxu1  ;;  %v2441_v21 = vld [vmem:[%s3182_s5 + $0x40] sm:$0xff]   ;;  %v2447_v27 = vld [vmem:[%s3182_s5 + $0x8] sm:$0xff]   ;;  %v2451_v30 = vld [vmem:[%s3182_s5 + $0x10] sm:$0xff]  }
  0xe8   :  { %v306_v31 = vmax.f32 %v237_v23, 0.0  ;;  %v241_v32 = vadd.f32 %v240_v29, %v115_v54  ;;  %v242_v33 = vpop.f32.mrb[7].mxu0  ;;  %491 = vmatmul.mubr.bf16.vlgmr.msra.gmra.mrb[8].mxu0 %v2742_v13  ;;  %668 = vmatmul.mubr.bf16.vlgmr.msra.gmra.mrb[8].mxu1 %v2742_v13  ;;  %v290_v44 = vadd.f32 %v289_v40, %v123_v61  ;;  %v291_v45 = vpop.f32.mrb[5].mxu1  ;;  %v2442_v22 = vld [vmem:[%s3182_s5 + $0x140] sm:$0xff]   ;;  %v2449_v29 = vld [vmem:[%s3182_s5 + $0x50] sm:$0xff]  }
  0xe9   :  { %v307_v35 = vmax.f32 %v239_v28, 0.0  ;;  %v243_v36 = vadd.f32 %v242_v33, %v119_v56  ;;  %2182 = vmatpush3.bf16.msra.mxu0 %v2411_v19  ;;  %2210 = vmatpush3.bf16.msra.mxu1 %v2412_v20  ;;  %v292_v47 = vadd.f32 %v291_v45, %v2739_v0  ;;  %v293_v48 = vpop.f32.mrb[6].mxu1  ;;  %v2419_v56 = vld [vmem:[%s3180_s3 + $0x110] sm:$0xff]   ;;  %v2439_v19 = vld [vmem:[%s3180_s3 + $0x138] sm:$0xff]   ;;  %v2443_v23 = vld [vmem:[%s3182_s5] sm:$0xff]  }
  0xea   :  { %v310_v41 = vmax.f32 %v241_v32, 0.0  ;;  %2183 = vmatprep.subr.bf16.mxu0 %v2413_v25  ;;  %2211 = vmatprep.subr.bf16.mxu1 %v2414_v26  ;;  %v308_v52 = vmax.f32 %v290_v44, 0.0  ;;  %v294_v53 = vadd.f32 %v293_v48, %v123_v61  ;;  %v295_v54 = vpop.f32.mrb[7].mxu1  ;;  %v2440_v20 = vld [vmem:[%s3182_s5 + $0xb8] sm:$0xff]   ;;  %v2444_v24 = vld [vmem:[%s3182_s5 + $0x100] sm:$0xff]   ;;  %v2445_v25 = vld [vmem:[%s3182_s5 + $0x48] sm:$0xff]  }
  0xeb   :  { %v311_v46 = vmax.f32 %v243_v36, 0.0  ;;  %v309_v58 = vmax.f32 %v292_v47, 0.0  ;;  %v296_v59 = vadd.f32 %v295_v54, %v2739_v0  ;;  %v2446_v26 = vld [vmem:[%s3182_s5 + $0x148] sm:$0xff]   ;;  %v2453_v32 = vld [vmem:[%s3182_s5 + $0x58] sm:$0xff]   ;;  %v2459_v40 = vld [vmem:[%s3182_s5 + $0x20] sm:$0xff]  }
  0xec   :  { %v2780_v51 = vpack.c.bf16 %v310_v41, %v306_v31  ;;  %v312_v61 = vmax.f32 %v294_v53, 0.0  ;;  %v2448_v28 = vld [vmem:[%s3182_s5 + $0x108] sm:$0xff]   ;;  %v2452_v31 = vld [vmem:[%s3182_s5 + $0x110] sm:$0xff]   ;;  %v2454_v33 = vld [vmem:[%s3182_s5 + $0x158] sm:$0xff]  }
  0xed   :  { %v2782_v55 = vpack.c.bf16 %v311_v46, %v307_v35  ;;  %2184 = vmatpush3.bf16.msra.mxu0 %v2415_v37  ;;  %2212 = vmatpush3.bf16.msra.mxu1 %v2416_v38  ;;  %v313_v63 = vmax.f32 %v296_v59, 0.0  ;;  %v2455_v35 = vld [vmem:[%s3182_s5 + $0x18] sm:$0xff]   ;;  %v2457_v37 = vld [vmem:[%s3182_s5 + $0x60] sm:$0xff]   ;;  %v2461_v41 = vld [vmem:[%s3182_s5 + $0x68] sm:$0xff]  }
  0xee   :  { %2185 = vmatprep.subr.bf16.mxu0 %v2417_v42  ;;  %2213 = vmatprep.subr.bf16.mxu1 %v2418_v43  ;;  %v2801_v0 = vpack.c.bf16 %v312_v61, %v308_v52  ;;  %v2456_v36 = vld [vmem:[%s3182_s5 + $0x118] sm:$0xff]   ;;  %v2458_v38 = vld [vmem:[%s3182_s5 + $0x160] sm:$0xff]   ;;  %v2462_v42 = vld [vmem:[%s3182_s5 + $0x168] sm:$0xff]  }
  0xef   :  { %498 = vmatprep.mubr.bf16.mxu0 %v2782_v55  ;;  %675 = vmatprep.mubr.bf16.mxu1 %v2782_v55  ;;  %v2809_v3 = vpack.c.bf16 %v313_v63, %v309_v58  ;;  %v2463_v43 = vld [vmem:[%s3182_s5 + $0x28] sm:$0xff]   ;;  %v2465_v45 = vld [vmem:[%s3182_s5 + $0x70] sm:$0xff]   ;;  %v2470_v52 = vld [vmem:[%s3182_s5 + $0x178] sm:$0xff]  }
  0xf0   :  { %499 = vmatmul.mubr.bf16.gmra.mrb[12].mxu0 %v2780_v51  ;;  %676 = vmatmul.mubr.bf16.gmra.mrb[12].mxu1 %v2780_v51  ;;  %v2464_v44 = vld [vmem:[%s3182_s5 + $0x128] sm:$0xff]   ;;  %v2466_v46 = vld [vmem:[%s3182_s5 + $0x170] sm:$0xff]   ;;  %v2471_v53 = vld [vmem:[%s3182_s5 + $0x38] sm:$0xff]  }
  0xf1   :  { %2186 = vmatpush3.bf16.msra.mxu0 %v2419_v56  ;;  %2214 = vmatpush3.bf16.msra.mxu1 %v2420_v57  ;;  %v2467_v47 = vld [vmem:[%s3182_s5 + $0x30] sm:$0xff]   ;;  %v2472_v54 = vld [vmem:[%s3182_s5 + $0x138] sm:$0xff]   ;;  %v2474_v56 = vld [vmem:[%s3184_s7 + $0x8] sm:$0xff]  }
  0xf2   :  { %870 = vmatprep.mubr.bf16.mxu0 %v2744_v17  ;;  %2187 = vmatprep.subr.bf16.mxu0 %v2421_v60  ;;  %v2437_v17 = vld [vmem:[%s3180_s3 + $0x178] sm:$0xff]   ;;  %v2468_v48 = vld [vmem:[%s3182_s5 + $0x130] sm:$0xff]   ;;  %v2477_v58 = vld [vmem:[%s3184_s7 + $0x20] sm:$0xff]   ;;  %s1849_s3 = sshll.u32 %s2532_s19, 4  ;;  %s1850_s3 = int_to_ptr.vmem [resolvable:$true] %s1849_s3 }
  0xf3   :  { %2215 = vmatprep.subr.bf16.mxu1 %v2422_v62  ;;  %1084 = vmatprep.mubr.bf16.mxu1 %v2771_v39  ;;  %v2476_v57 = vld [vmem:[%s3184_s7 + $0x18] sm:$0xff]   ;;  %v2478_v59 = vld [vmem:[%s3184_s7 + $0x28] sm:$0xff]   ;;  %v2479_v60 = vld [vmem:[%s3184_s7 + $0x30] sm:$0xff]   ;;  %s2505_s2 = scalar_lea.vmem %s1850_s3, 512  ;;  %p2510_p1 = scmp.lt.s32.totalorder %s1850_s3, %s1850_s3 }
  0xf4   :  { %v2480_v61 = vld [vmem:[%s3184_s7 + $0x38] sm:$0xff]   ;;  %v2481_v62 = vld [vmem:[%s3185_s8] sm:$0xff]   ;;  %v2482_v63 = vld [vmem:[%s3185_s8 + $0x8] sm:$0xff]   ;;  %p2506_p0 = scmp.ne.s32.totalorder %s1850_s3, %s2505_s2  ;;  %p2511_p2 = scmp.lt.s32.totalorder %s2505_s2, %s2505_s2 }
  0xf5   :  { %2188 = vmatpush3.bf16.msra.mxu0 %v2423_v1  ;;  %2216 = vmatpush3.bf16.msra.mxu1 %v2424_v2  ;;  %v2484_v1 = vld [vmem:[%s3185_s8 + $0x18] sm:$0xff]   ;;  %v2485_v2 = vld [vmem:[%s3185_s8 + $0x20] sm:$0xff]  }
  0xf6   :  { %2189 = vmatprep.subr.bf16.mxu0 %v2425_v4  ;;  %2217 = vmatprep.subr.bf16.mxu1 %v2426_v5  ;;  %v2487_v4 = vld [vmem:[%s3185_s8 + $0x30] sm:$0xff]   ;;  %v2488_v5 = vld [vmem:[%s3185_s8 + $0x38] sm:$0xff]   ;;  %p2512_p3 = por %p2511_p2, %p2510_p1 }
  0xf8   :  { %p2513_p4 = pnand %p2512_p3, %p2506_p0 }
  0xf9   :  { %2190 = vmatpush3.bf16.msra.mxu0 %v2427_v6  ;;  %2218 = vmatpush3.bf16.msra.mxu1 %v2428_v7 }
  0xfa   :  { %2191 = vmatprep.subr.bf16.mxu0 %v2429_v8  ;;  %2219 = vmatprep.subr.bf16.mxu1 %v2430_v9 }
  0xfd   :  { %2192 = vmatpush3.bf16.msra.mxu0 %v2431_v10  ;;  %2220 = vmatpush3.bf16.msra.mxu1 %v2432_v11 }
  0xfe   :  { %2193 = vmatprep.subr.bf16.mxu0 %v2433_v12  ;;  %2221 = vmatprep.subr.bf16.mxu1 %v2434_v14 }
 0x101   :  { %2194 = vmatpush3.bf16.msra.mxu0 %v2435_v15  ;;  %2222 = vmatpush3.bf16.msra.mxu1 %v2436_v16 }
 0x102   :  { %2195 = vmatprep.subr.bf16.mxu0 %v2437_v17  ;;  %2223 = vmatprep.subr.bf16.mxu1 %v2438_v18  ;;  %v46_v17 = vadd.s32 16, %v2730_v50 }
 0x105   :  { %2196 = vmatpush3.bf16.msra.mxu0 %v2439_v19  ;;  %2224 = vmatpush3.bf16.msra.mxu1 %v2440_v20  ;;  %v1910_v20 = vld [vmem:[%s3181_s4] ss:$0 sm:$0xff] }
 0x106   :  { %2237 = vmatprep.subr.bf16.mxu0 %v2441_v21  ;;  %2265 = vmatprep.subr.bf16.mxu1 %v2442_v22 }
 0x108   :  { %871 = vmatmul.mubr.bf16.vlgmr.msra.gmra.mrb[16].mxu0 %v2742_v13  ;;  %1085 = vmatmul.mubr.bf16.vlgmr.msra.gmra.mrb[16].mxu1 %v2763_v34  ;;  %v2450_v13 = vld [vmem:[%s3182_s5 + $0x150] sm:$0xff]  }
 0x109   :  { %878 = vmatprep.mubr.bf16.mxu0 %v2782_v55  ;;  %2238 = vmatpush3.bf16.msra.mxu0 %v2443_v23  ;;  %v2473_v55 = vld [vmem:[%s3184_s7] sm:$0xff]  }
 0x10a   :  { %2266 = vmatpush3.bf16.msra.mxu1 %v2444_v24  ;;  %2239 = vmatprep.subr.bf16.mxu0 %v2445_v25  ;;  %v66_v24 = vand.u32 15, %v46_v17 }
 0x10b   :  { %2267 = vmatprep.subr.bf16.mxu1 %v2446_v26  ;;  %1092 = vmatprep.mubr.bf16.mxu1 %v2809_v3 }
 0x10c   :  { %vm3029_vm3 = vcmp.eq.s32.totalorder %v66_v24, 0 }
 0x10d   :  { %2240 = vmatpush3.bf16.msra.mxu0 %v2447_v27 }
 0x10e   :  { %2268 = vmatpush3.bf16.msra.mxu1 %v2448_v28  ;;  %2241 = vmatprep.subr.bf16.mxu0 %v2449_v29 }
 0x10f   :  { %2269 = vmatprep.subr.bf16.mxu1 %v2450_v13 }
 0x110   :  { %879 = vmatmul.mubr.bf16.gmra.mrb[20].mxu0 %v2780_v51  ;;  %1093 = vmatmul.mubr.bf16.gmra.mrb[20].mxu1 %v2801_v0  ;;  %v2469_v51 = vld [vmem:[%s3182_s5 + $0x78] sm:$0xff]  }
 0x111   :  { %2242 = vmatpush3.bf16.msra.mxu0 %v2451_v30  ;;  %1261 = vmatprep.mubr.bf16.mxu0 %v2771_v39 }
 0x112   :  { %2270 = vmatpush3.bf16.msra.mxu1 %v2452_v31  ;;  %1455 = vmatprep.mubr.bf16.mxu1 %v2771_v39  ;;  %v2460_v39 = vld [vmem:[%s3182_s5 + $0x120] sm:$0xff]  }
 0x113   :  { %2243 = vmatprep.subr.bf16.mxu0 %v2453_v32  ;;  %2271 = vmatprep.subr.bf16.mxu1 %v2454_v33  ;;  %v52_v33 = vand.u32 15, %v2730_v50 }
 0x115   :  { %2244 = vmatpush3.bf16.msra.mxu0 %v2455_v35  ;;  %vm3035_vm4 = vcmp.eq.s32.totalorder %v52_v33, 0 }
 0x116   :  { %2272 = vmatpush3.bf16.msra.mxu1 %v2456_v36  ;;  %2245 = vmatprep.subr.bf16.mxu0 %v2457_v37 }
 0x117   :  { %2273 = vmatprep.subr.bf16.mxu1 %v2458_v38 }
 0x119   :  { %2246 = vmatpush3.bf16.msra.mxu0 %v2459_v40 }
 0x11a   :  { %2274 = vmatpush3.bf16.msra.mxu1 %v2460_v39  ;;  %2247 = vmatprep.subr.bf16.mxu0 %v2461_v41 }
 0x11b   :  { %2275 = vmatprep.subr.bf16.mxu1 %v2462_v42 }
 0x11d   :  { %2248 = vmatpush3.bf16.msra.mxu0 %v2463_v43 }
 0x11e   :  { %2276 = vmatpush3.bf16.msra.mxu1 %v2464_v44  ;;  %2249 = vmatprep.subr.bf16.mxu0 %v2465_v45 }
 0x11f   :  { %2277 = vmatprep.subr.bf16.mxu1 %v2466_v46 }
 0x121   :  { %2250 = vmatpush3.bf16.msra.mxu0 %v2467_v47 }
 0x122   :  { %2278 = vmatpush3.bf16.msra.mxu1 %v2468_v48  ;;  %2251 = vmatprep.subr.bf16.mxu0 %v2469_v51 }
 0x123   :  { %2279 = vmatprep.subr.bf16.mxu1 %v2470_v52 }
 0x125   :  { %2252 = vmatpush3.bf16.msra.mxu0 %v2471_v53 }
 0x126   :  { %2280 = vmatpush3.bf16.msra.mxu1 %v2472_v54  ;;  %2333 = vmatprep.subr.bf16.mxu0 %v2473_v55 }
 0x127   :  { %2313 = vmatprep.subr.bf16.mxu1 %v2481_v62 }
 0x128   :  { %1262 = vmatmul.mubr.bf16.vlgmr.msra.gmra.mrb[24].mxu0 %v2763_v34 }
 0x129   :  { %1456 = vmatmul.mubr.bf16.vlgmr.msra.gmra.mrb[24].mxu1 %v2763_v34  ;;  %1269 = vmatprep.mubr.bf16.mxu0 %v2809_v3  ;;  %v2475_v34 = vld [vmem:[%s3184_s7 + $0x10] sm:$0xff]  }
 0x12a   :  { %1463 = vmatprep.mubr.bf16.mxu1 %v2809_v3  ;;  %2334 = vmatpush3.bf16.msra.mxu0 %v2473_v55  ;;  %v2486_v3 = vld [vmem:[%s3185_s8 + $0x28] sm:$0xff]  }
 0x12b   :  { %2335 = vmatprep.subr.bf16.mxu0 %v2474_v56  ;;  %2314 = vmatpush3.bf16.msra.mxu1 %v2481_v62 }
 0x12c   :  { %2315 = vmatprep.subr.bf16.mxu1 %v2482_v63 }
 0x12e   :  { %2336 = vmatpush3.bf16.msra.mxu0 %v2474_v56 }
 0x12f   :  { %2337 = vmatprep.subr.bf16.mxu0 %v2475_v34  ;;  %2316 = vmatpush3.bf16.msra.mxu1 %v2482_v63 }
 0x130   :  { %1270 = vmatmul.mubr.bf16.gmra.mrb[28].mxu0 %v2801_v0 }
 0x131   :  { %1464 = vmatmul.mubr.bf16.gmra.mrb[28].mxu1 %v2801_v0  ;;  %v2483_v0 = vld [vmem:[%s3185_s8 + $0x10] sm:$0xff]  }
 0x132   :  { %2338 = vmatpush3.bf16.msra.mxu0 %v2475_v34  ;;  %2317 = vmatprep.subr.bf16.mxu1 %v2483_v0 }
 0x133   :  { %2339 = vmatprep.subr.bf16.mxu0 %v2476_v57  ;;  %2318 = vmatpush3.bf16.msra.mxu1 %v2483_v0 }
 0x134   :  { %2319 = vmatprep.subr.bf16.mxu1 %v2484_v1 }
 0x136   :  { %2340 = vmatpush3.bf16.msra.mxu0 %v2476_v57 }
 0x137   :  { %2341 = vmatprep.subr.bf16.mxu0 %v2477_v58  ;;  %2320 = vmatpush3.bf16.msra.mxu1 %v2484_v1 }
 0x138   :  { %2321 = vmatprep.subr.bf16.mxu1 %v2485_v2 }
 0x13a   :  { %2342 = vmatpush3.bf16.msra.mxu0 %v2477_v58 }
 0x13b   :  { %2343 = vmatprep.subr.bf16.mxu0 %v2478_v59  ;;  %2322 = vmatpush3.bf16.msra.mxu1 %v2485_v2 }
 0x13c   :  { %2323 = vmatprep.subr.bf16.mxu1 %v2486_v3 }
 0x13e   :  { %2344 = vmatpush3.bf16.msra.mxu0 %v2478_v59 }
 0x13f   :  { %2345 = vmatprep.subr.bf16.mxu0 %v2479_v60  ;;  %2324 = vmatpush3.bf16.msra.mxu1 %v2486_v3 }
 0x140   :  { %2325 = vmatprep.subr.bf16.mxu1 %v2487_v4 }
 0x142   :  { %2346 = vmatpush3.bf16.msra.mxu0 %v2479_v60 }
 0x143   :  { %2347 = vmatprep.subr.bf16.mxu0 %v2480_v61  ;;  %2326 = vmatpush3.bf16.msra.mxu1 %v2487_v4  ;;  %v45_v4 = vadd.s32 8, %v2730_v50 }
 0x144   :  { %2327 = vmatprep.subr.bf16.mxu1 %v2488_v5 }
 0x146   :  { %2348 = vmatpush3.bf16.msra.mxu0 %v2480_v61 }
 0x147   :  { %2328 = vmatpush3.bf16.msra.mxu1 %v2488_v5 }
 0x1bb   :  { %v2141_v6 = vpop.f32.mrb[8].mxu0  ;;  %v2169_v7 = vpop.f32.mrb[8].mxu1 }
 0x1bc   :  { %v2142_v8 = vpop.f32.mrb[9].mxu0  ;;  %v2170_v9 = vpop.f32.mrb[9].mxu1 }
 0x1bd   :  { %v2143_v10 = vadd.f32 %v2142_v8, %v2141_v6  ;;  %v2171_v11 = vadd.f32 %v2170_v9, %v2169_v7  ;;  %v2144_v12 = vpop.f32.mrb[10].mxu0  ;;  %v2172_v14 = vpop.f32.mrb[10].mxu1  ;;  %v47_v7 = vadd.s32 24, %v2730_v50 }
 0x1be   :  { %v2145_v15 = vpop.f32.mrb[11].mxu0  ;;  %v2173_v16 = vpop.f32.mrb[11].mxu1 }
 0x1bf   :  { %v2146_v18 = vadd.f32 %v2145_v15, %v2144_v12  ;;  %v2174_v19 = vadd.f32 %v2173_v16, %v2172_v14  ;;  %v684_v21 = vrot.slane %v2171_v11, 7  ;;  %v493_v48 = vadd.f32 %v2143_v10, %v1910_v20 }
 0x1c0   :  { %v59_v10 = vand.u32 15, %v45_v4 }
 0x1c1   :  { %v496_v22 = vadd.f32 %v2146_v18, %v1910_v20  ;;  %v685_v23 = vrot.slane %v2174_v19, 7  ;;  %v73_v18 = vand.u32 15, %v47_v7 }
 0x1c2   :  { %vm3056_vm6 = vcmp.eq.s32.totalorder %v59_v10, 15 }
 0x1c3   :  { %v691_v25 = vsel %vm688_vm2, %v684_v21, %v685_v23  ;;  %v2175_v26 = vpop.f32.mrb[12].mxu1  ;;  %v2147_v27 = vpop.f32.mrb[12].mxu0  ;;  %vm3062_vm7 = vcmp.eq.s32.totalorder %v73_v18, 15 }
 0x1c4   :  { %v3026_v28 = vadd.f32 %v691_v25, %v496_v22  ;;  %v2176_v29 = vpop.f32.mrb[13].mxu1  ;;  %v2148_v13 = vpop.f32.mrb[13].mxu0 }
 0x1c5   :  { %v2177_v30 = vadd.f32 %v2176_v29, %v2175_v26  ;;  %v2178_v31 = vpop.f32.mrb[14].mxu1  ;;  %v2149_v32 = vadd.f32 %v2148_v13, %v2147_v27  ;;  %v2150_v35 = vpop.f32.mrb[14].mxu0 }
 0x1c6   :  { %v2179_v37 = vpop.f32.mrb[15].mxu1  ;;  %v2151_v38 = vpop.f32.mrb[15].mxu0 }
 0x1c7   :  { %v686_v40 = vrot.slane %v2177_v30, 7  ;;  %v501_v39 = vadd.f32 %v2149_v32, %v1910_v20  ;;  %v2180_v41 = vadd.f32 %v2179_v37, %v2178_v31  ;;  %v2152_v42 = vadd.f32 %v2151_v38, %v2150_v35 }
 0x1c9   :  { %v690_v43 = vsel %vm688_vm2, %v685_v23, %v686_v40  ;;  %v687_v45 = vrot.slane %v2180_v41, 7  ;;  %v504_v46 = vadd.f32 %v2152_v42, %v1910_v20 }
 0x1ca   :  { %v703_v47 = vsel %vm3029_vm3, 0.0, %v690_v43 }
 0x1cb   :  { %v707_v51 = vadd.f32 %v703_v47, %v501_v39  ;;  %v692_v52 = vsel %vm688_vm2, %v687_v45, %v684_v21  ;;  %v689_v53 = vsel %vm688_vm2, %v686_v40, %v687_v45 }
 0x1cc   :  { %v701_v54 = vsel %vm3035_vm4, 0.0, %v692_v52  ;;  %v708_v55 = vadd.f32 %v689_v53, %v504_v46 }
 0x1cd   :  { %v705_v56 = vadd.f32 %v701_v54, %v493_v48 }
 0x1db   :  { %v2197_v34 = vpop.f32.mrb[16].mxu0  ;;  %v2225_v57 = vpop.f32.mrb[16].mxu1 }
 0x1dc   :  { %v2198_v58 = vpop.f32.mrb[17].mxu0  ;;  %v2226_v59 = vpop.f32.mrb[17].mxu1 }
 0x1dd   :  { %v2199_v60 = vadd.f32 %v2198_v58, %v2197_v34  ;;  %v3047_v61 = vadd.f32 %v2226_v59, %v2225_v57  ;;  %v2200_v62 = vpop.f32.mrb[18].mxu0  ;;  %v2228_v63 = vpop.f32.mrb[18].mxu1  ;;  %v2023_v58 = vld [vmem:[%s3183_s6] ss:$0 sm:$0xff] }
 0x1de   :  { %v2201_v0 = vpop.f32.mrb[19].mxu0  ;;  %v2229_v1 = vpop.f32.mrb[19].mxu1 }
 0x1df   :  { %v2202_v2 = vadd.f32 %v2201_v0, %v2200_v62  ;;  %v2230_v3 = vadd.f32 %v2229_v1, %v2228_v63  ;;  %v887_v5 = vrot.slane %v2199_v60, 1 }
 0x1e1   :  { %v888_v6 = vrot.slane %v2202_v2, 1  ;;  %v1090_v62 = vadd.f32 %v2230_v3, %v2023_v58 }
 0x1e3   :  { %v894_v8 = vsel %vm891_vm5, %v887_v5, %v888_v6  ;;  %v2203_v9 = vpop.f32.mrb[20].mxu0  ;;  %v2231_v11 = vpop.f32.mrb[20].mxu1 }
 0x1e4   :  { %v2204_v12 = vpop.f32.mrb[21].mxu0  ;;  %v2232_v14 = vpop.f32.mrb[21].mxu1  ;;  %v3054_v15 = vadd.f32 %v894_v8, %v705_v56 }
 0x1e5   :  { %v2205_v16 = vadd.f32 %v2204_v12, %v2203_v9  ;;  %v2206_v17 = vpop.f32.mrb[22].mxu0  ;;  %v2233_v19 = vadd.f32 %v2232_v14, %v2231_v11  ;;  %v2234_v20 = vpop.f32.mrb[22].mxu1 }
 0x1e6   :  { %v2207_v21 = vpop.f32.mrb[23].mxu0  ;;  %v2235_v22 = vpop.f32.mrb[23].mxu1  ;;  %v912_v40 = vmax.f32 %v3054_v15, 0.0 }
 0x1e7   :  { %v889_v24 = vrot.slane %v2205_v16, 1  ;;  %v2208_v25 = vadd.f32 %v2207_v21, %v2206_v17  ;;  %v2236_v26 = vadd.f32 %v2235_v22, %v2234_v20  ;;  %v1087_v21 = vadd.f32 %v3047_v61, %v2023_v58 }
 0x1e8   :  { %v1095_v22 = vadd.f32 %v2233_v19, %v2023_v58 }
 0x1e9   :  { %v893_v27 = vsel %vm891_vm5, %v888_v6, %v889_v24  ;;  %v890_v13 = vrot.slane %v2208_v25, 1 }
 0x1ea   :  { %v905_v30 = vsel %vm3056_vm6, 0.0, %v893_v27  ;;  %v1098_v27 = vadd.f32 %v2236_v26, %v2023_v58 }
 0x1eb   :  { %v892_v31 = vsel %vm891_vm5, %v889_v24, %v890_v13  ;;  %v895_v32 = vsel %vm891_vm5, %v890_v13, %v887_v5  ;;  %v3073_v33 = vadd.f32 %v905_v30, %v3026_v28 }
 0x1ec   :  { %v907_v35 = vsel %vm3062_vm7, 0.0, %v895_v32  ;;  %v3077_v37 = vadd.f32 %v892_v31, %v707_v51 }
 0x1ed   :  { %v3079_v38 = vadd.f32 %v907_v35, %v708_v55  ;;  %v913_v39 = vmax.f32 %v3073_v33, 0.0 }
 0x1ee   :  { %v914_v41 = vmax.f32 %v3077_v37, 0.0 }
 0x1ef   :  { %v915_v42 = vmax.f32 %v3079_v38, 0.0  ;;  %v1500_v28 = vpack.c.bf16 %v913_v39, %v912_v40  ;;  %v2120_v38 = vld [vmem:[%s3186_s9] ss:$0 sm:$0xff]  ;;  %s2530_s9 = smov 127  }
 0x1f1   :  { %v1501_v43 = vpack.c.bf16 %v915_v42, %v914_v41  ;;  %2349 = vmatprep.mubr.bf16.mxu0 %v1500_v28 }
 0x1f3   :  { %2350 = vmatmul.mubr.bf16.vlgmr.msra.gmra.mrb[32].mxu0 %v1501_v43 }
 0x1fb   :  { %v2253_v45 = vpop.f32.mrb[24].mxu0 }
 0x1fc   :  { %v2281_v46 = vpop.f32.mrb[24].mxu1  ;;  %v2254_v47 = vpop.f32.mrb[25].mxu0 }
 0x1fd   :  { %v2255_v48 = vadd.f32 %v2254_v47, %v2253_v45  ;;  %v2282_v51 = vpop.f32.mrb[25].mxu1  ;;  %v2256_v52 = vpop.f32.mrb[26].mxu0 }
 0x1fe   :  { %v2283_v53 = vadd.f32 %v2282_v51, %v2281_v46  ;;  %v2284_v54 = vpop.f32.mrb[26].mxu1  ;;  %v2257_v55 = vpop.f32.mrb[27].mxu0 }
 0x1ff   :  { %v2258_v56 = vadd.f32 %v2257_v55, %v2256_v52  ;;  %v2285_v34 = vpop.f32.mrb[27].mxu1  ;;  %v1278_v59 = vrot.slane %v2255_v48, 7 }
 0x200   :  { %v2286_v57 = vadd.f32 %v2285_v34, %v2284_v54  ;;  %v1472_v63 = vrot.slane %v2283_v53, 1 }
 0x201   :  { %v1279_v60 = vrot.slane %v2258_v56, 7 }
 0x202   :  { %v1473_v0 = vrot.slane %v2286_v57, 1 }
 0x203   :  { %v1284_v1 = vsel %vm688_vm2, %v1278_v59, %v1279_v60  ;;  %v2259_v2 = vpop.f32.mrb[28].mxu0 }
 0x204   :  { %v1291_v4 = vadd.f32 %v1284_v1, %v1090_v62  ;;  %v1478_v5 = vsel %vm891_vm5, %v1472_v63, %v1473_v0  ;;  %v2287_v6 = vpop.f32.mrb[28].mxu1  ;;  %v2260_v7 = vpop.f32.mrb[29].mxu0 }
 0x205   :  { %v2261_v8 = vadd.f32 %v2260_v7, %v2259_v2  ;;  %v2288_v9 = vpop.f32.mrb[29].mxu1  ;;  %v2262_v10 = vpop.f32.mrb[30].mxu0 }
 0x206   :  { %v2289_v11 = vadd.f32 %v2288_v9, %v2287_v6  ;;  %v2290_v12 = vpop.f32.mrb[30].mxu1  ;;  %v2263_v14 = vpop.f32.mrb[31].mxu0 }
 0x207   :  { %v1280_v16 = vrot.slane %v2261_v8, 7  ;;  %v2264_v3 = vadd.f32 %v2263_v14, %v2262_v10  ;;  %v2291_v17 = vpop.f32.mrb[31].mxu1 }
 0x208   :  { %v1474_v18 = vrot.slane %v2289_v11, 1  ;;  %v2292_v20 = vadd.f32 %v2291_v17, %v2290_v12 }
 0x209   :  { %v1283_v24 = vsel %vm688_vm2, %v1279_v60, %v1280_v16  ;;  %v1281_v25 = vrot.slane %v2264_v3, 7 }
 0x20a   :  { %v1288_v13 = vsel %vm3029_vm3, 0.0, %v1283_v24  ;;  %v1477_v30 = vsel %vm891_vm5, %v1473_v0, %v1474_v18  ;;  %v1475_v31 = vrot.slane %v2292_v20, 1 }
 0x20b   :  { %v1292_v32 = vadd.f32 %v1288_v13, %v1095_v22  ;;  %v1481_v35 = vsel %vm3056_vm6, 0.0, %v1477_v30  ;;  %v1282_v61 = vsel %vm688_vm2, %v1280_v16, %v1281_v25  ;;  %v1285_v19 = vsel %vm688_vm2, %v1281_v25, %v1278_v59 }
 0x20c   :  { %v1286_v26 = vsel %vm3035_vm4, 0.0, %v1285_v19  ;;  %v1293_v28 = vadd.f32 %v1282_v61, %v1098_v27  ;;  %v1476_v36 = vsel %vm891_vm5, %v1474_v18, %v1475_v31  ;;  %v1479_v43 = vsel %vm891_vm5, %v1475_v31, %v1472_v63 }
 0x20d   :  { %v1290_v45 = vadd.f32 %v1286_v26, %v1087_v21  ;;  %v1483_v23 = vsel %vm3062_vm7, 0.0, %v1479_v43  ;;  %v1486_v46 = vadd.f32 %v1476_v36, %v1292_v32  ;;  %v1485_v47 = vadd.f32 %v1481_v35, %v1291_v4 }
 0x20e   :  { %v1487_v48 = vadd.f32 %v1483_v23, %v1293_v28 }
 0x20f   :  { %v1490_v51 = vmax.f32 %v1486_v46, 0.0  ;;  %v1484_v52 = vadd.f32 %v1478_v5, %v1290_v45  ;;  %v1489_v53 = vmax.f32 %v1485_v47, 0.0 }
 0x210   :  { %v1491_v54 = vmax.f32 %v1487_v48, 0.0 }
 0x211   :  { %v1494_v44 = vadd.f32 %v1490_v51, %v914_v41  ;;  %v1488_v55 = vmax.f32 %v1484_v52, 0.0  ;;  %v1493_v56 = vadd.f32 %v1489_v53, %v913_v39 }
 0x212   :  { %v1495_v50 = vadd.f32 %v1491_v54, %v915_v42  ;;  %v1519_v34 = vpack.c.bf16 %v1491_v54, %v1490_v51 }
 0x213   :  { %1498 = vst [vmem:[#allocation2 + $0x10] sm:$0xff] %v1494_v44  ;;  %v1492_v29 = vadd.f32 %v1488_v55, %v912_v40  ;;  %1497 = vst [vmem:[#allocation2 + $0x8] sm:$0xff] %v1493_v56  ;;  %v1518_v57 = vpack.c.bf16 %v1489_v53, %v1488_v55 }
 0x214   :  { %1499 = vst [vmem:[#allocation2 + $0x18] sm:$0xff] %v1495_v50 }
 0x215   :  { %1496 = vst [vmem:[#allocation2] sm:$0xff] %v1492_v29  ;;  %2329 = vmatprep.mubr.bf16.mxu1 %v1518_v57 }
 0x216   :  { %2330 = vmatmul.mubr.bf16.vlgmr.msra.gmra.mrb[32].mxu1 %v1519_v34 }
 0x2c6   :  { %v2351_v37 = vpop.f32.mrb[32].mxu0 }
 0x2c7   :  { %v1715_v41 = vpop.f32.mrb[33].mxu0 }
 0x2c8   :  { %v2352_v58 = vpop.f32.mrb[34].mxu0 }
 0x2c9   :  { %v1718_v59 = vpop.f32.mrb[35].mxu0 }
 0x2e9   :  { %v2331_v33 = vpop.f32.mrb[32].mxu1 }
 0x2ea   :  { %v1724_v39 = vadd.f32 %v2351_v37, %v2331_v33  ;;  %v1618_v42 = vpop.f32.mrb[33].mxu1 }
 0x2eb   :  { %v1716_v60 = vadd.f32 %v1715_v41, %v1618_v42  ;;  %v2332_v15 = vpop.f32.mrb[34].mxu1 }
 0x2ec   :  { %v1739_v40 = vadd.f32 %v2120_v38, %v1724_v39  ;;  %v1727_v62 = vadd.f32 %v2352_v58, %v2332_v15  ;;  %v1621_v63 = vpop.f32.mrb[35].mxu1 }
 0x2ed   :  { %v1737_v0 = vadd.f32 %v2120_v38, %v1716_v60  ;;  %v1719_v1 = vadd.f32 %v1718_v59, %v1621_v63 }
 0x2ee   :  { %v2123_v2 = vmul.f32 -1.442695, %v1739_v40  ;;  %v1740_v4 = vadd.f32 %v2120_v38, %v1727_v62 }
 0x2ef   :  { %v2121_v5 = vmul.f32 -1.442695, %v1737_v0  ;;  %v1738_v6 = vadd.f32 %v2120_v38, %v1719_v1 }
 0x2f0   :  { %2489 = vpow2.f32 %v2123_v2  ;;  %v2124_v7 = vmul.f32 -1.442695, %v1740_v4 }
 0x2f1   :  { %2491 = vpow2.f32 %v2121_v5  ;;  %v2122_v8 = vmul.f32 -1.442695, %v1738_v6 }
 0x2f2   :  { %2493 = vpow2.f32 %v2124_v7 }
 0x2f3   :  { %2495 = vpow2.f32 %v2122_v8 }
 0x2fa   :  { %v2490_v9 = vpop.eup %2489 }
 0x2fb   :  { %v2492_v10 = vpop.eup %2491  ;;  %v1755_v11 = vadd.f32 1.0, %v2490_v9 }
 0x2fc   :  { %v2494_v12 = vpop.eup %2493  ;;  %v1753_v14 = vadd.f32 1.0, %v2492_v10 }
 0x2fd   :  { %2497 = vrcp.f32 %v1755_v11  ;;  %v1756_v16 = vadd.f32 1.0, %v2494_v12  ;;  %v2496_v3 = vpop.eup %2495 }
 0x2fe   :  { %2499 = vrcp.f32 %v1753_v14  ;;  %v1754_v17 = vadd.f32 1.0, %v2496_v3 }
 0x2ff   :  { %2501 = vrcp.f32 %v1756_v16 }
 0x300   :  { %2503 = vrcp.f32 %v1754_v17 }
 0x307   :  { %v3132_v18 = vpop.eup %2497 }
 0x308   :  { %v2500_v20 = vpop.eup %2499  ;;  %1773 = vrot.lane.b32.xlu1 %v3132_v18, %s2530_s9 }
 0x309   :  { %1769 = vrot.lane.b32.xlu0 %v2500_v20, %s2530_s9  ;;  %v3135_v21 = vpop.eup %2501 }
 0x30a   :  { %v2504_v22 = vpop.eup %2503 }
 0x30c   :  { %1775 = vrot.lane.b32.xlu1 %v3135_v21, %s2530_s9 }
 0x30d   :  { %1785 = vrot.lane.b32.xlu0 %v2500_v20, %s2531_s18 }
 0x310   :  { %1787 = vrot.lane.b32.xlu1 %v2504_v22, %s2531_s18 }
 0x311   :  { %1771 = vrot.lane.b32.xlu0 %v2504_v22, %s2530_s9 }
 0x314   :  { %1791 = vrot.lane.b32.xlu1 %v3135_v21, %s2531_s18 }
 0x315   :  { %1789 = vrot.lane.b32.xlu0 %v3132_v18, %s2531_s18 }
 0x37a   :  { %v1774_v24 = vpop.permute.xlu1 %1773 }
 0x37b   :  { %v1770_v25 = vpop.permute.xlu0 %1769  ;;  %v1783_v28 = vadd.f32 %v3132_v18, %v1774_v24 }
 0x37c   :  { %v1781_v27 = vadd.f32 %v2500_v20, %v1770_v25 }
 0x37e   :  { %v1776_v13 = vpop.permute.xlu1 %1775 }
 0x37f   :  { %v1786_v30 = vpop.permute.xlu0 %1785  ;;  %v1784_v26 = vadd.f32 %v3135_v21, %v1776_v13 }
 0x380   :  { %v1797_v31 = vadd.f32 %v1786_v30, %v1781_v27 }
 0x382   :  { %v1801_v32 = vmul.f32 0.33333334, %v1797_v31  ;;  %v1788_v35 = vpop.permute.xlu1 %1787 }
 0x383   :  { %v1772_v61 = vpop.permute.xlu0 %1771 }
 0x384   :  { %v1782_v19 = vadd.f32 %v2504_v22, %v1772_v61  ;;  %1815 = vperm.xlu0 %2363, %v1801_v32  }
 0x386   :  { %v1798_v36 = vadd.f32 %v1788_v35, %v1782_v19  ;;  %v1792_v43 = vpop.permute.xlu1 %1791 }
 0x387   :  { %v1800_v45 = vadd.f32 %v1792_v43, %v1784_v26  ;;  %v1790_v23 = vpop.permute.xlu0 %1789 }
 0x388   :  { %v1802_v46 = vmul.f32 0.33333334, %v1798_v36  ;;  %v1799_v47 = vadd.f32 %v1790_v23, %v1783_v28 }
 0x389   :  { %v1804_v48 = vmul.f32 0.33333334, %v1800_v45 }
 0x38a   :  { %1820 = vperm.xlu1 %2364, %v1802_v46   ;;  %v1803_v51 = vmul.f32 0.33333334, %v1799_v47 }
 0x38b   :  { %1830 = vperm.xlu0 %2363, %v1804_v48  }
 0x38e   :  { %1825 = vperm.xlu1 %2364, %v1803_v51  }
 0x38f   :  { %2516 = shalt.err (!%p2513_p4)
}
 0x390   :  { %s2517_s22 = scalar_lea.hbm %s3188_s11, 512 }
 0x391   :  { %p2518_p5 = scmp.ne.s32.totalorder %s3188_s11, %s2517_s22  ;;  %p2521_p6 = scmp.lt.u32.totalorder %s2517_s22, %s3188_s11 }
 0x393   :  { %p2523_p7 = pnand %p2521_p6, %p2518_p5 }
 0x395   :  { %2526 = shalt.err (!%p2523_p7)
}
 0x396   :  { %s2533_s27 = smov 128   ;;  %s2534_s7 = smov 8   ;;  %v1806_v52 = vand.u32 127, %v43_v49  ;;  %vm1837_vm10 = vcmask 64512  }
 0x397   :  { %1855 = dma.vmem_to_hbm [thread:$0]  %s1850_s3, 512, %s3188_s11, [#allocation3], %s2533_s27, %s2533_s27, %s2534_s7  }
 0x398   :  { %vm1808_vm8 = vcmp.lt.s32.totalorder %v1806_v52, 3  ;;  %vm1807_vm9 = vcmp.eq.s32.totalorder %v1806_v52, 3 }
 0x399   :  { %v1809_v54 = vsel %vm1808_vm8, %v2500_v20, 0.0  ;;  %v1810_v55 = vsel %vm1808_vm8, %v2504_v22, 0.0  ;;  %v1812_v34 = vsel %vm1808_vm8, %v3135_v21, 0.0  ;;  %v1811_v57 = vsel %vm1808_vm8, %v3132_v18, 0.0 }
 0x403   :  { %v1816_v53 = vpop.permute.xlu0 %1815 }
 0x404   :  { %v1833_v44 = vsel %vm1807_vm9, %v1816_v53, %v1809_v54 }
 0x405   :  { %1838 = vst.msk [vmem:[%s3187_s10] sm:$0xff] %vm1837_vm10, %v1833_v44 }
 0x409   :  { %v1821_v56 = vpop.permute.xlu1 %1820 }
 0x40a   :  { %v1834_v50 = vsel %vm1807_vm9, %v1821_v56, %v1810_v55  ;;  %v1831_v29 = vpop.permute.xlu0 %1830 }
 0x40b   :  { %1839 = vst.msk [vmem:[%s3187_s10 + $0x8] sm:$0xff] %vm1837_vm10, %v1834_v50  ;;  %v1836_v49 = vsel %vm1807_vm9, %v1831_v29, %v1812_v34 }
 0x40c   :  { %1841 = vst.msk [vmem:[%s3187_s10 + $0x18] sm:$0xff] %vm1837_vm10, %v1836_v49 }
 0x40d   :  { %v1826_v37 = vpop.permute.xlu1 %1825 }
 0x40e   :  { %v1835_v41 = vsel %vm1807_vm9, %v1826_v37, %v1811_v57 }
 0x40f   :  { %1840 = vst.msk [vmem:[%s3187_s10 + $0x10] sm:$0xff] %vm1837_vm10, %v1835_v41 }
 0x410   :  { %2527 = dma.done.wait [#allocation3], 512  }
 0x411   :  { %2528 = vsyncadd [#allocation3], 4294966784 }
 0x412   :  { %1861 = vsyncpa [#allocation3], 1 }

</bundles_post_ra>
